<compile_context>
chip_gen: v7x
topology: tpu7x:2x2x1
jax: 0.10.0
libtpu: 0.0.40
codegen_flags: <defaults>
</compile_context>

<pallas_src>
import math

import jax
import jax.numpy as jnp
from jax.experimental import pallas as pl
from jax.experimental.pallas import tpu as pltpu


# ---------------------------------------------------------------------------
# Kernel: LayerNorm (no affine) + per-batch scale/shift modulation on one
# (tile_t, D) tile.  x_ref is in the input dtype; scale/shift are f32 (1, D).
# ---------------------------------------------------------------------------
def _make_kernel(eps):
    def kernel(x_ref, scale_ref, shift_ref, out_ref):
        x = x_ref[...].astype(jnp.float32)                    # (tile_t, D)
        inv_d = jnp.float32(1.0 / x.shape[-1])
        mean = jnp.sum(x, axis=-1, keepdims=True) * inv_d
        mean_sq = jnp.sum(x * x, axis=-1, keepdims=True) * inv_d
        var = mean_sq - mean * mean                           # E[x^2] - E[x]^2
        xn = (x - mean) * jax.lax.rsqrt(var + eps)
        out = xn * (1.0 + scale_ref[...]) + shift_ref[...]    # bcast (1, D)
        out_ref[...] = out.astype(out_ref.dtype)

    return kernel


# ---------------------------------------------------------------------------
# Tile-size heuristic: byte budget per x tile, generation-aware.
# ---------------------------------------------------------------------------
def _tile_byte_budget():
    # ~1/32 of physical VMEM per x tile.  4 live tiles (x-in + out, double
    # buffered) then use ~1/8 of VMEM: ~8 MiB on v7x (64 MiB), ~16 MiB on
    # v5e/v6e (128 MiB) — well inside the scoped limit we set below.
    try:
        vmem = pltpu.get_tpu_info().vmem_capacity_bytes
    except Exception:
        vmem = 64 << 20
    return int(min(max(vmem // 32, 1 << 20), 4 << 20))


def _pick_tile_t(T, D, itemsize):
    rows = _tile_byte_budget() // max(itemsize * D, 1)
    rows = max((rows // 8) * 8, 8)       # keep the sublane dim 8-aligned
    if rows >= T:
        return T                         # whole (short) sequence per tile
    return int(rows)                     # partial last tile handled by cdiv


# ---------------------------------------------------------------------------
# Wrapper
# ---------------------------------------------------------------------------
def ada_layer_norm(x, timestep, w, bias, label_emb=None, *, eps=1e-5):
    """Pallas TPU forward pass of AdaLayerNorm.

    x:         (B, T, D)  any float dtype (bf16/f32); output matches x.dtype
    timestep:  (B,)       diffusion timesteps (float or int)
    w:         (D, 2*D)   linear weight pre-transposed so proj = h @ w + bias
                          (PyTorch nn.Linear stores (2D, D); pass weight.T)
    bias:      (2*D,)
    label_emb: optional (B, D)
    """
    B, T, D = x.shape
    assert D % 2 == 0, "n_embd must be even (sin/cos halves)"
    half_dim = D // 2
    log_scale = math.log(10000.0) / max(half_dim - 1, 1)

    # ---- tiny per-batch path: done once in the wrapper (negligible XLA op) --
    freqs = jnp.exp(jnp.arange(half_dim, dtype=jnp.float32) * (-log_scale))
    ang = timestep.astype(jnp.float32).reshape(B, 1) * freqs[None, :]
    emb = jnp.concatenate([jnp.sin(ang), jnp.cos(ang)], axis=-1)     # (B, D)
    if label_emb is not None:
        emb = emb + label_emb.astype(jnp.float32)
    h = emb * jax.nn.sigmoid(emb)                                    # SiLU
    proj = h @ w.astype(jnp.float32) + bias.astype(jnp.float32).reshape(1, -1)
    scale = proj[:, :D].reshape(B, 1, D)                             # (B,1,D)
    shift = proj[:, D:].reshape(B, 1, D)                             # (B,1,D)

    # ---- fused LayerNorm + modulation kernel over (B, T, D) ----------------
    itemsize = jnp.dtype(x.dtype).itemsize
    tile_t = _pick_tile_t(T, D, itemsize)
    grid = (B, pl.cdiv(T, tile_t))

    bytes_accessed = 2 * B * T * D * itemsize + 2 * B * D * 4
    cost = pl.CostEstimate(flops=9 * B * T * D,
                           transcendentals=B * T,         # rsqrt per row
                           bytes_accessed=bytes_accessed)

    return pl.pallas_call(
        _make_kernel(eps),
        out_shape=jax.ShapeDtypeStruct((B, T, D), x.dtype),
        grid=grid,
        in_specs=[
            pl.BlockSpec((pl.Squeezed(), tile_t, D), lambda b, t: (b, t, 0)),
            pl.BlockSpec((pl.Squeezed(), 1, D), lambda b, t: (b, 0, 0)),
            pl.BlockSpec((pl.Squeezed(), 1, D), lambda b, t: (b, 0, 0)),
        ],
        out_specs=pl.BlockSpec((pl.Squeezed(), tile_t, D),
                               lambda b, t: (b, t, 0)),
        compiler_params=pltpu.CompilerParams(
            dimension_semantics=("parallel", "parallel"),
            vmem_limit_bytes=32 << 20),
        cost_estimate=cost,
    )(x, scale, shift)


# ---------------------------------------------------------------------------
# Pure-JAX reference (mirror of the PyTorch AdaLayerNorm.forward)
# ---------------------------------------------------------------------------
def _reference(x, timestep, w, bias, label_emb=None, eps=1e-5):
    B, T, D = x.shape
    half_dim = D // 2
    log_scale = math.log(10000.0) / max(half_dim - 1, 1)
    freqs = jnp.exp(jnp.arange(half_dim, dtype=jnp.float32) * -log_scale)
    ang = timestep.astype(jnp.float32)[:, None] * freqs[None, :]
    emb = jnp.concatenate([jnp.sin(ang), jnp.cos(ang)], axis=-1)     # (B, D)
    if label_emb is not None:
        emb = emb + label_emb.astype(jnp.float32)
    h = emb * jax.nn.sigmoid(emb)
    proj = h @ w.astype(jnp.float32) + bias.astype(jnp.float32)      # (B, 2D)
    scale, shift = proj[:, :D], proj[:, D:]
    xf = x.astype(jnp.float32)
    mean = jnp.mean(xf, axis=-1, keepdims=True)
    var = jnp.mean((xf - mean) ** 2, axis=-1, keepdims=True)
    xn = (xf - mean) * jax.lax.rsqrt(var + eps)
    return xn * (1.0 + scale[:, None, :]) + shift[:, None, :]


if __name__ == "__main__":
    key = jax.random.PRNGKey(0)
    k1, k2, k3, k4, k5 = jax.random.split(key, 5)

    B, T, D = 2, 8, 32        # batch, seq, n_embd
    x = jax.random.normal(k1, (B, T, D), dtype=jnp.float32)
    timestep = jax.random.randint(k2, (B,), 0, 1000).astype(jnp.float32)
    # nn.Linear(D, 2D) parameters, weight stored pre-transposed as (D, 2D)
    w = jax.random.normal(k3, (D, 2 * D), dtype=jnp.float32) * 0.02
    bias = jax.random.normal(k4, (2 * D,), dtype=jnp.float32) * 0.02
    label_emb = jax.random.normal(k5, (B, D), dtype=jnp.float32)

    # 1) f32, no label_emb (default path)
    out = jax.block_until_ready(ada_layer_norm(x, timestep, w, bias))
    ref = _reference(x, timestep, w, bias)
    assert out.shape == (B, T, D) and out.dtype == x.dtype
    assert jnp.allclose(out, ref, atol=2e-3, rtol=2e-3), float(
        jnp.max(jnp.abs(out - ref)))

    # 2) f32, with label_emb
    out2 = jax.block_until_ready(
        ada_layer_norm(x, timestep, w, bias, label_emb=label_emb))
    ref2 = _reference(x, timestep, w, bias, label_emb=label_emb)
    assert jnp.allclose(out2, ref2, atol=2e-3, rtol=2e-3), float(
        jnp.max(jnp.abs(out2 - ref2)))

    # 3) bf16 I/O (native-dtype path: output comes back in bf16)
    x_bf = x.astype(jnp.bfloat16)
    out3 = jax.block_until_ready(
        ada_layer_norm(x_bf, timestep, w, bias, label_emb=label_emb))
    assert out3.dtype == jnp.bfloat16
    ref3 = _reference(x_bf, timestep, w, bias, label_emb=label_emb)
    assert jnp.allclose(out3.astype(jnp.float32), ref3, atol=3e-2, rtol=3e-2), \
        float(jnp.max(jnp.abs(out3.astype(jnp.float32) - ref3)))

    print("KERNEL_OK")
</pallas_src>

<mosaic_0001>
module attributes {stable_mosaic.version = 11 : i64} {
  func.func @kernel(%arg0: i32, %arg1: i32, %arg2: memref<1x8x32xf32, #tpu.memory_space<vmem>>, %arg3: memref<1x1x32xf32, #tpu.memory_space<vmem>>, %arg4: memref<1x1x32xf32, #tpu.memory_space<vmem>>, %arg5: memref<1x8x32xf32, #tpu.memory_space<vmem>>) attributes {dimension_semantics = [#tpu.dimension_semantics<parallel>, #tpu.dimension_semantics<parallel>], iteration_bounds = array<i64: 2, 1>, scalar_prefetch = 0 : i64, scratch_operands = 0 : i64, tpu.core_type = #tpu.core_type<tc>, window_params = [{transform_indices = @transform_0, window_bounds = array<i64: 1, 8, 32>}, {transform_indices = @transform_1, window_bounds = array<i64: 1, 1, 32>}, {transform_indices = @transform_2, window_bounds = array<i64: 1, 1, 32>}, {transform_indices = @transform_3, window_bounds = array<i64: 1, 8, 32>}]} {
    %c0 = arith.constant 0 : index
    %c0_0 = arith.constant 0 : index
    %c0_1 = arith.constant 0 : index
    %0 = vector.load %arg2[%c0, %c0_0, %c0_1] : memref<1x8x32xf32, #tpu.memory_space<vmem>>, vector<1x8x32xf32>
    %1 = vector.shape_cast %0 : vector<1x8x32xf32> to vector<8x32xf32>
    %cst = arith.constant dense<0.000000e+00> : vector<8xf32>
    %2 = vector.multi_reduction <add>, %1, %cst [1] : vector<8x32xf32> to vector<8xf32>
    %3 = vector.shape_cast %2 : vector<8xf32> to vector<8x1xf32>
    %cst_2 = arith.constant 3.125000e-02 : f32
    %4 = vector.broadcast %cst_2 : f32 to vector<8x1xf32>
    %5 = arith.mulf %3, %4 : vector<8x1xf32>
    %6 = arith.mulf %1, %1 : vector<8x32xf32>
    %cst_3 = arith.constant dense<0.000000e+00> : vector<8xf32>
    %7 = vector.multi_reduction <add>, %6, %cst_3 [1] : vector<8x32xf32> to vector<8xf32>
    %8 = vector.shape_cast %7 : vector<8xf32> to vector<8x1xf32>
    %cst_4 = arith.constant 3.125000e-02 : f32
    %9 = vector.broadcast %cst_4 : f32 to vector<8x1xf32>
    %10 = arith.mulf %8, %9 : vector<8x1xf32>
    %11 = arith.mulf %5, %5 : vector<8x1xf32>
    %12 = arith.subf %10, %11 : vector<8x1xf32>
    %13 = vector.broadcast %5 : vector<8x1xf32> to vector<8x32xf32>
    %14 = arith.subf %1, %13 : vector<8x32xf32>
    %cst_5 = arith.constant 9.99999974E-6 : f32
    %15 = vector.broadcast %cst_5 : f32 to vector<8x1xf32>
    %16 = arith.addf %12, %15 : vector<8x1xf32>
    %17 = math.rsqrt %16 : vector<8x1xf32>
    %18 = vector.broadcast %17 : vector<8x1xf32> to vector<8x32xf32>
    %19 = arith.mulf %14, %18 : vector<8x32xf32>
    %c0_6 = arith.constant 0 : index
    %c0_7 = arith.constant 0 : index
    %c0_8 = arith.constant 0 : index
    %20 = vector.load %arg3[%c0_6, %c0_7, %c0_8] : memref<1x1x32xf32, #tpu.memory_space<vmem>>, vector<1x1x32xf32>
    %21 = vector.shape_cast %20 : vector<1x1x32xf32> to vector<1x32xf32>
    %cst_9 = arith.constant 1.000000e+00 : f32
    %22 = vector.broadcast %cst_9 : f32 to vector<1x32xf32>
    %23 = arith.addf %22, %21 : vector<1x32xf32>
    %24 = vector.broadcast %23 : vector<1x32xf32> to vector<8x32xf32>
    %25 = arith.mulf %19, %24 : vector<8x32xf32>
    %c0_10 = arith.constant 0 : index
    %c0_11 = arith.constant 0 : index
    %c0_12 = arith.constant 0 : index
    %26 = vector.load %arg4[%c0_10, %c0_11, %c0_12] : memref<1x1x32xf32, #tpu.memory_space<vmem>>, vector<1x1x32xf32>
    %27 = vector.shape_cast %26 : vector<1x1x32xf32> to vector<1x32xf32>
    %28 = vector.broadcast %27 : vector<1x32xf32> to vector<8x32xf32>
    %29 = arith.addf %25, %28 : vector<8x32xf32>
    %c0_13 = arith.constant 0 : index
    %c0_14 = arith.constant 0 : index
    %c0_15 = arith.constant 0 : index
    %30 = vector.load %arg5[%c0_13, %c0_14, %c0_15] : memref<1x8x32xf32, #tpu.memory_space<vmem>>, vector<1x8x32xf32>
    %31 = vector.shape_cast %30 : vector<1x8x32xf32> to vector<8x32xf32>
    %32 = vector.shape_cast %29 : vector<8x32xf32> to vector<1x8x32xf32>
    tpu.vector_store %arg5[%c0_13, %c0_14, %c0_15], %32 {strides = array<i32>} : memref<1x8x32xf32, #tpu.memory_space<vmem>>, vector<1x8x32xf32>,
    return
  }
  func.func @transform_0(%arg0: i32, %arg1: i32) -> (i32, i32, i32) {
    %c0_i32 = arith.constant 0 : i32
    %c0_i32_0 = arith.constant 0 : i32
    return %arg0, %arg1, %c0_i32 : i32, i32, i32
  }
  func.func @transform_1(%arg0: i32, %arg1: i32) -> (i32, i32, i32) {
    %c0_i32 = arith.constant 0 : i32
    %c0_i32_0 = arith.constant 0 : i32
    %c0_i32_1 = arith.constant 0 : i32
    return %arg0, %c0_i32, %c0_i32_0 : i32, i32, i32
  }
  func.func @transform_2(%arg0: i32, %arg1: i32) -> (i32, i32, i32) {
    %c0_i32 = arith.constant 0 : i32
    %c0_i32_0 = arith.constant 0 : i32
    %c0_i32_1 = arith.constant 0 : i32
    return %arg0, %c0_i32, %c0_i32_0 : i32, i32, i32
  }
  func.func @transform_3(%arg0: i32, %arg1: i32) -> (i32, i32, i32) {
    %c0_i32 = arith.constant 0 : i32
    %c0_i32_0 = arith.constant 0 : i32
    return %arg0, %arg1, %c0_i32 : i32, i32, i32
  }
}

</mosaic_0001>

<bundles_post_ra>
// kernel: tpu_custom_call.1
= control target key start
LH: loop header
LB: loop body
LE: loop exit
PB: predicated region body
PF: predicated region fallthrough
CT: control target
= control target key end

     0   :  { %8 = vsyncpa [#allocation3], 0  ;;  %s780_s0 = inlined_call_operand.hbm [shape: f32[2,8,32], index: 0, kind: input, shape index: {}]   ;;  %s781_s1 = inlined_call_operand.vmem [shape: f32[2,1,32], index: 1, kind: input, shape index: {}]   ;;  %s782_s2 = inlined_call_operand.vmem [shape: f32[2,1,32], index: 2, kind: input, shape index: {}]   ;;  %s783_s3 = inlined_call_operand.hbm [shape: f32[2,8,32], index: 3, kind: output, shape index: {}]  }
   0x1   :  { %10 = vsyncpa [#allocation3 + $0x1], 0 }
   0x2   :  { %11 = vsyncpa [#allocation4], 0 }
   0x3   :  { %13 = vsyncpa [#allocation4 + $0x1], 0  ;;  %s593_s12 = smov 0   ;;  %s595_s13 = smov 0  }
   0x4   :  { %s597_s14 = smov 0   ;;  %s599_s15 = smov 0  }
   0x5   :  { %s601_s16 = smov 0   ;;  %s603_s17 = smov 0  }
   0x6 LB: > { %s379_s18 = sadd.s32 4294967295, %s569_s17   ;;  %s380_s19 = sadd.s32 4294967294, %s569_s17   ;;  %s569_s17 = sphi %s603_s17, %s19_s17   ;;  %s565_s16 = sphi %s601_s16, %s799_s16   ;;  %s561_s15 = sphi %s599_s15, %s798_s15   ;;  %s557_s14 = sphi %s597_s14, %s797_s14   ;;  %s553_s13 = sphi %s595_s13, %s796_s13   ;;  %s549_s12 = sphi %s593_s12, %s795_s12  }
   0x7   : > { %s31_s20 = sadd.s32 1, %s565_s16  ;;  %s40_s21 = sadd.s32 1, %s557_s14 }
   0x8   : > { %p33_p0 = scmp.ge.s32.totalorder %s31_s20, 2  ;;  %p47_p1 = scmp.ne.s32.totalorder %s557_s14, %s553_s13 }
   0x9   : > { %p48_p2 = scmp.eq.s32.totalorder %s569_s17, 0  ;;  %p53_p3 = scmp.ne.s32.totalorder %s553_s13, %s549_s12 }
   0xa   : > { %s801_s20 = smov (%p33_p0, %s31_s20), 0  ;;  %p54_p5 = scmp.eq.s32.totalorder %s379_s18, 0 }
   0xb   : > { %p634_p4 = por %p48_p2, %p47_p1  ;;  %s35_s23 = ssub.s32 %s565_s16, %s801_s20 }
   0xc   : > { %p131_p6 = scmp.eq.s32.totalorder %s379_s18, 1  ;;  %p38_p7 = scmp.eq.s32.totalorder %s35_s23, 0 }
   0xd   : > { %p640_p8 = por %p54_p5, %p53_p3  ;;  %p137_p10 = scmp.eq.s32.totalorder %s380_s19, 1 }
   0xe   : > { %p644_p9 = por %p131_p6, %p47_p1  ;;  %p405_p13 = scmp.lt.s32.totalorder %s569_s17, 2 }
   0xf   : > { %s649_s26 = scalar_select %p38_p7, %s557_s14, %s40_s21  }
  0x10   : > { %s787_s25 = scalar_select %p644_p9, 1, 0 }
  0x11   : > { %p651_p11 = por %p137_p10, %p53_p3  ;;  %s157_s28 = sand.u32 1, %s557_s14  }
  0x12   : > { %s383_s29 = sshll.u32 %s157_s28, 3  ;;  %s384_s30 = sshll.u32 %s565_s16, 7 }
  0x13   : > { %s788_s27 = scalar_select %p651_p11, 1, 0 }
  0x14   : > { %s662_s6 = scalar_lea.hbm %s780_s0, %s384_s30  ;;  %s161_s7 = scalar_lea.vmem [#allocation2], %s383_s29 }
  0x15   : > { %s169_s8 = sshll.u32 %s161_s7, 4  ;;  %p668_p0 = pnand %p405_p13, %p634_p4  ;;  %s664_s8 = int_to_ptr.vmem [resolvable:$true] %s169_s8 }
  0x16   : > { %s158_s10 = scalar_lea.sflag [#allocation3], %s157_s28  ;;  %s457_s11 = scalar_lea.hbm %s662_s6, 128 }
  0x17   : > { %p458_p3 = scmp.ne.s32.totalorder %s662_s6, %s457_s11  ;;  %p459_p5 = pneg %p668_p0 }
  0x18   : > { %s462_s21 = scalar_lea.hbm %s780_s0, 256  ;;  %p463_p4 = scmp.lt.u32.totalorder %s662_s6, %s780_s0 }
  0x19   : > { %p460_p6 = pnand %p459_p5, %p458_p3  ;;  %p464_p10 = scmp.lt.u32.totalorder %s462_s21, %s457_s11 }
  0x1a   : > { %p466_p12 = scmp.lt.u32.totalorder %s457_s11, %s662_s6 }
  0x1b   : > { %p461_p7 = pneg %p460_p6  ;;  %p465_p13 = por %p464_p10, %p463_p4 }
  0x1d   : > { %p467_p1 = por %p466_p12, %p465_p13 }
  0x1f   : > { %p468_p2 = pnand %p467_p1, %p461_p7 }
  0x21   : > { %471 = shalt.err (!%p468_p2)
}
  0x22   : > { %s472_s28 = scalar_lea.vmem %s664_s8, 128  ;;  %s571_s29 = smov [#allocation2]  }
  0x23   : > { %p473_p3 = scmp.ne.s32.totalorder %s664_s8, %s472_s28  ;;  %s477_s30 = sshll.u32 %s571_s29, 4  ;;  %s478_s30 = int_to_ptr.vmem [resolvable:$false] %s477_s30 }
  0x24   : > { %s479_s4 = scalar_lea.vmem %s478_s30, 256  ;;  %p480_p9 = scmp.lt.s32.totalorder %s664_s8, %s478_s30 }
  0x25   : > { %p475_p6 = pnand %p473_p3, %p459_p5  ;;  %p481_p4 = scmp.lt.s32.totalorder %s479_s4, %s472_s28 }
  0x27   : > { %p476_p11 = pneg %p475_p6  ;;  %p482_p10 = por %p481_p4, %p480_p9 }
  0x29   : > { %p483_p12 = pnand %p482_p10, %p476_p11 }
  0x2b   : > { %486 = shalt.err (!%p483_p12)
}
  0x2c   : > { %400 = dma.hbm_to_vmem [thread:$0]  (!%p668_p0), %s662_s6, 128, %s664_s8, %s158_s10  }
  0x2d   : > { %p790_p1 = scmp.lt.s32.totalorder %s569_s17, 3  ;;  %p791_p2 = scmp.ge.s32.totalorder %s569_s17, 1 }
  0x2f   : > { %p187_p5 = pnand %p791_p2, %p790_p1 }
  0x30   : > { %s704_s5 = sand.u32 (!%p187_p5), 1, %s553_s13  }
  0x31   : > { %190 = sbr.rel (%p187_p5) target bundleno = 242 (0xf2), region = 32  ;;  %s386_s7 = sshll.u32 (!%p187_p5), %s704_s5, 3 }
  0x32   : > { %s193_s11 = scalar_lea.sflag (!%p187_p5), [#allocation3], %s704_s5  ;;  %s196_s9 = scalar_lea.vmem (!%p187_p5), [#allocation2], %s386_s7 }
  0x38   : > { %540 = dma.done.wait (%p640_p8), %s193_s11, 128  }
  0x39   : > { %542 = vsyncadd (%p640_p8), %s193_s11, 4294967168  ;;  %vm232_vm0 = vcmask 261120   ;;  %v231_v0 = vld [vmem:[%s196_s9] sm:$0xff]  ;;  %p225_p9 = scmp.lt.s32.totalorder %s561_s15, 1  ;;  %v251_v10 = vlaneseq  ;;  %s390_s22 = sshll.u32 %s561_s15, 7 }
  0x3a   : > { %v233_v1 = vsel %vm232_vm0, %v231_v0, 0.0  ;;  %v237_v2 = vmul.f32 %v231_v0, %v231_v0  ;;  %s224_s23 = scalar_lea.vmem [#allocation5], %s386_s7  ;;  %s730_s4 = scalar_lea.hbm %s783_s3, %s390_s22 }
  0x3b   : > { %234 = vadd.xlane.f32.xlu0 %v233_v1  ;;  %s226_s6 = scalar_select %p225_p9, %s561_s15, 1  ;;  %v252_v12 = vshrl.u32 %v251_v10, 7 }
  0x3c   : > { %v238_v3 = vsel %vm232_vm0, %v237_v2, 0.0  ;;  %s281_s28 = sshll.u32 %s224_s23, 4  ;;  %s267_s11 = scalar_lea.sflag [#allocation4], %s704_s5  ;;  %s732_s28 = int_to_ptr.vmem [resolvable:$true] %s281_s28 }
  0x3d   : > { %s227_s10 = scalar_lea.vmem %s781_s1, %s226_s6  ;;  %v253_v15 = vsub.s32 0, %v252_v12  ;;  %s230_s21 = scalar_lea.vmem %s782_s2, %s226_s6 }
  0x3e   : > { %v248_v13 = vld [vmem:[%s227_s10] sm:$0x1]  ;;  %s487_s9 = scalar_lea.vmem %s732_s28, 128  ;;  %p792_p11 = scmp.ne.s32.totalorder %s787_s25, 0 }
  0x3f   : > { %239 = vadd.xlane.f32.xlu0 %v238_v3  ;;  %v249_v14 = vadd.f32 1.0, %v248_v13  ;;  %v388_v20 = vld [vmem:[%s230_s21] ss:$0 sm:$0xff]  ;;  %p488_p8 = scmp.ne.s32.totalorder %s732_s28, %s487_s9  ;;  %s572_s15 = smov [#allocation5]  }
  0x40   : > { %s491_s7 = sshll.u32 %s572_s15, 4  ;;  %s492_s7 = int_to_ptr.vmem [resolvable:$false] %s491_s7 }
  0x41   : > { %v254_v17 = vrot.slane %v249_v14, %v253_v15  ;;  %p489_p0 = pnand %p488_p8, %p792_p11  ;;  %s493_s6 = scalar_lea.vmem %s492_s7, 256 }
  0x42   : > { %p494_p13 = scmp.lt.s32.totalorder %s732_s28, %s492_s7  ;;  %p495_p3 = scmp.lt.s32.totalorder %s493_s6, %s487_s9 }
  0x43   : > { %p490_p7 = pneg %p489_p0 }
  0x44   : > { %p496_p6 = por %p495_p3, %p494_p13 }
  0x46   : > { %p497_p4 = pnand %p496_p6, %p490_p7 }
  0xc8   : > { %v235_v4 = vpop.xlane.xlu0 %234 }
  0xc9   : > { %v236_v5 = vmul.f32 0.03125, %v235_v4 }
  0xcb   : > { %v242_v7 = vmul.f32 %v236_v5, %v236_v5  ;;  %v244_v16 = vsub.f32 %v231_v0, %v236_v5 }
  0xcc   : > { %v240_v6 = vpop.xlane.xlu0 %239 }
  0xcd   : > { %v241_v8 = vmul.f32 0.03125, %v240_v6 }
  0xcf   : > { %v243_v9 = vsub.f32 %v241_v8, %v242_v7 }
  0xd1   : > { %v245_v11 = vadd.f32 1e-05, %v243_v9 }
  0xd3   : > { %455 = vrsqrt.f32 %v245_v11 }
  0xdd   : > { %v456_v18 = vpop.eup %455 }
  0xde   : > { %v247_v19 = vmul.f32 %v456_v18, %v244_v16 }
  0xe0   : > { %v256_v21 = vmul.f32 %v254_v17, %v247_v19 }
  0xe2   : > { %v264_v22 = vadd.f32 %v388_v20, %v256_v21 }
  0xe4   : > { %265 = vst.msk [vmem:[%s224_s23] sm:$0xff] %vm232_vm0, %v264_v22 }
  0xe5   : > { %500 = shalt.err (!%p497_p4)
}
  0xe6   : > { %s501_s5 = scalar_lea.hbm %s730_s4, 128  ;;  %s505_s10 = scalar_lea.hbm %s783_s3, 256 }
  0xe7   : > { %p502_p10 = scmp.ne.s32.totalorder %s730_s4, %s501_s5  ;;  %p506_p2 = scmp.lt.u32.totalorder %s730_s4, %s783_s3 }
  0xe8   : > { %p507_p5 = scmp.lt.u32.totalorder %s505_s10, %s501_s5  ;;  %p509_p8 = scmp.lt.u32.totalorder %s501_s5, %s730_s4 }
  0xe9   : > { %p503_p12 = pnand %p502_p10, %p792_p11 }
  0xea   : > { %p508_p9 = por %p507_p5, %p506_p2 }
  0xeb   : > { %p504_p1 = pneg %p503_p12 }
  0xec   : > { %p510_p0 = por %p509_p8, %p508_p9 }
  0xee   : > { %p511_p7 = pnand %p510_p0, %p504_p1 }
  0xf0   : > { %514 = shalt.err (!%p511_p7)
}
  0xf1   : > { %395 = dma.vmem_to_hbm [thread:$0]  (%p792_p11), %s732_s28, 128, %s730_s4, %s267_s11  }
  0xf2 PF: > { %s293_s21 = sand.u32 1, %s549_s12   ;;  %p793_p13 = scmp.ne.s32.totalorder %s788_s27, 0 }
  0xf3   : > { %p794_p3 = scmp.ge.s32.totalorder %s569_s17, 2  ;;  %s294_s22 = scalar_lea.sflag [#allocation4], %s293_s21 }
  0xf5   : > { %p402_p6 = pnand %p794_p3, %p793_p13 }
  0xf7   : > { %544 = dma.done.wait (!%p402_p6), %s294_s22, 128  }
  0xf8   : > { %546 = vsyncadd (!%p402_p6), %s294_s22, 4294967168  ;;  %s19_s17 = sadd.s32 1, %s569_s17   ;;  %s795_s12 = smov %s553_s13 }
  0xf9   : > { %p16_p4 = scmp.ge.s32.totalorder %s19_s17, 4   ;;  %s796_s13 = smov %s557_s14 }
  0xfa   : > { %s797_s14 = smov %s649_s26  ;;  %s798_s15 = smov %s565_s16 }
  0xfb   : > { %s799_s16 = smov %s801_s20  ;;  %18 = sbr.rel (!%p16_p4) target bundleno = 6 (0x6), region = 83 }
 0x102   :  { %299 = vsyncpa [#allocation3], 1 }
 0x103   :  { %301 = vsyncpa [#allocation3 + $0x1], 1 }
 0x104   :  { %302 = vsyncpa [#allocation4], 1 }
 0x105   :  { %304 = vsyncpa [#allocation4 + $0x1], 1 }

</bundles_post_ra>
